<compile_context>
chip_gen: v5e
topology: v5e:2x2
jax: 0.10.0
libtpu: 0.0.40
codegen_flags: <defaults>
</compile_context>

<pallas_src>
import functools

import jax
import jax.numpy as jnp
from jax import lax
from jax.experimental import pallas as pl
from jax.experimental.pallas import tpu as pltpu


def _pick_tm(m, d_in, d_out, vmem_budget_bytes=8 * 1024 * 1024):
    """Largest batch tile (rows) that fits the VMEM budget, sublane-aligned.

    Budget counts the double-buffered per-row traffic of the x tile and the
    y/out tiles (f32).  8 MiB keeps us well inside the default scoped VMEM on
    every generation (v5e/v6e: 16/32 MiB, v7x: 32 MiB).
    """
    per_row_bytes = 4 * (d_in + 2 * d_out) * 2  # f32, x2 for double buffering
    tm = vmem_budget_bytes // max(per_row_bytes, 1)
    tm = min(tm, m, 512)  # ~roofline already at 512 rows; keeps pipelining
    if m > 8:
        tm = max(8, (tm // 8) * 8)  # sublane multiple
    else:
        tm = m  # tiny batch: single full-extent block
    return int(tm)


def _linear_stats_kernel(x_ref, wT_ref, b_ref, gamma_ref, beta_ref,
                         y_ref, stats_ref, *, m_total, eps):
    """Linear (MXU) + running per-feature sum / sum-of-squares accumulation.

    stats_ref is a resident (2, D_out) output block (constant index_map across
    the 'arbitrary' batch-grid axis).  Rows: [0] sum -> scale, [1] sumsq -> shift
    after the last-step finalize.
    """
    i = pl.program_id(0)
    nsteps = pl.num_programs(0)
    tm = x_ref.shape[0]

    # MXU matmul with f32 accumulation; bias added in the epilogue.
    y = jnp.dot(x_ref[...], wT_ref[...],
                preferred_element_type=jnp.float32) + b_ref[...]
    y_ref[...] = y

    # Mask rows beyond the true batch size on a ragged last tile so that
    # unspecified padded data never reaches the statistics.
    if m_total % tm != 0:
        row = i * tm + lax.broadcasted_iota(jnp.int32, (tm, 1), 0)
        y_valid = jnp.where(row < m_total, y, 0.0)
    else:
        y_valid = y

    @pl.when(i == 0)
    def _():
        stats_ref[...] = jnp.zeros_like(stats_ref)

    stats_ref[0:1, :] = stats_ref[0:1, :] + jnp.sum(y_valid, axis=0, keepdims=True)
    stats_ref[1:2, :] = stats_ref[1:2, :] + jnp.sum(y_valid * y_valid, axis=0,
                                                    keepdims=True)

    @pl.when(i == nsteps - 1)
    def _():
        inv_m = 1.0 / m_total
        mean = stats_ref[0:1, :] * inv_m
        ex2 = stats_ref[1:2, :] * inv_m
        var = ex2 - mean * mean            # biased variance (training-mode BN)
        inv = lax.rsqrt(var + eps)
        scale = gamma_ref[...] * inv
        shift = beta_ref[...] - mean * scale
        stats_ref[0:1, :] = scale
        stats_ref[1:2, :] = shift


def _bn_relu_kernel(y_ref, stats_ref, o_ref):
    """Apply the precomputed BN affine (scale, shift) and ReLU, lane-dense."""
    scale = stats_ref[0:1, :]
    shift = stats_ref[1:2, :]
    o_ref[...] = jnp.maximum(y_ref[...] * scale + shift, 0.0)


def dense_block(x, weight, bias, gamma, beta, *, eps=1e-5, tm=None):
    """ReLU(BatchNorm1d(Linear(x))) with training-mode batch statistics.

    x: (N, D_in), weight: (D_out, D_in) (PyTorch Linear layout),
    bias/gamma/beta: (D_out,).  Returns (N, D_out) float32.
    """
    x = x.astype(jnp.float32)
    N, D_in = x.shape
    D_out = weight.shape[0]
    if tm is None:
        tm = _pick_tm(N, D_in, D_out)
    grid = (pl.cdiv(N, tm),)

    wT = weight.astype(jnp.float32).T               # (D_in, D_out): lane-dense output
    b2 = bias.astype(jnp.float32).reshape(1, D_out)
    g2 = gamma.astype(jnp.float32).reshape(1, D_out)
    be2 = beta.astype(jnp.float32).reshape(1, D_out)

    kern1 = functools.partial(_linear_stats_kernel, m_total=N, eps=eps)

    # Pass 1: Linear + fused BN statistics (batch axis carries the stats
    # accumulator -> "arbitrary").
    y, stats = pl.pallas_call(
        kern1,
        out_shape=(
            jax.ShapeDtypeStruct((N, D_out), jnp.float32),
            jax.ShapeDtypeStruct((2, D_out), jnp.float32),
        ),
        grid=grid,
        in_specs=[
            pl.BlockSpec((tm, D_in), lambda i: (i, 0)),
            pl.BlockSpec((D_in, D_out), lambda i: (0, 0)),
            pl.BlockSpec((1, D_out), lambda i: (0, 0)),
            pl.BlockSpec((1, D_out), lambda i: (0, 0)),
            pl.BlockSpec((1, D_out), lambda i: (0, 0)),
        ],
        out_specs=(
            pl.BlockSpec((tm, D_out), lambda i: (i, 0)),
            pl.BlockSpec((2, D_out), lambda i: (0, 0)),
        ),
        compiler_params=pltpu.CompilerParams(dimension_semantics=("arbitrary",)),
    )(x, wT, b2, g2, be2)

    # Pass 2: elementwise normalize + ReLU; independent tiles -> "parallel"
    # (shards across both TensorCores on v7x).
    out = pl.pallas_call(
        _bn_relu_kernel,
        out_shape=jax.ShapeDtypeStruct((N, D_out), jnp.float32),
        grid=grid,
        in_specs=[
            pl.BlockSpec((tm, D_out), lambda i: (i, 0)),
            pl.BlockSpec((2, D_out), lambda i: (0, 0)),
        ],
        out_specs=pl.BlockSpec((tm, D_out), lambda i: (i, 0)),
        compiler_params=pltpu.CompilerParams(dimension_semantics=("parallel",)),
    )(y, stats)
    return out


if __name__ == "__main__":
    key = jax.random.PRNGKey(0)
    N, D_in, D_out = 256, 32, 128

    k1, k2, k3, k4, k5 = jax.random.split(key, 5)
    x = jax.random.normal(k1, (N, D_in), jnp.float32)
    weight = jax.random.normal(k2, (D_out, D_in), jnp.float32) * 0.1
    bias = jax.random.normal(k3, (D_out,), jnp.float32) * 0.1
    gamma = 1.0 + 0.1 * jax.random.normal(k4, (D_out,), jnp.float32)
    beta = 0.1 * jax.random.normal(k5, (D_out,), jnp.float32)

    # tm=128 forces a 2-step batch grid so the cross-tile statistics
    # accumulation path is exercised (auto-pick would use a single tile here).
    out = dense_block(x, weight, bias, gamma, beta, tm=128)
    out = jax.block_until_ready(out)

    # Pure-JAX reference of DenseBlock forward (training-mode BatchNorm1d).
    y_ref = x @ weight.T + bias
    mean = y_ref.mean(axis=0, keepdims=True)
    var = ((y_ref - mean) ** 2).mean(axis=0, keepdims=True)   # biased variance
    ref = (y_ref - mean) * jax.lax.rsqrt(var + 1e-5) * gamma + beta
    ref = jnp.maximum(ref, 0.0)

    assert out.shape == (N, D_out), out.shape
    max_err = float(jnp.max(jnp.abs(out - ref)))
    assert jnp.allclose(out, ref, atol=1e-4, rtol=1e-4), max_err

    print("KERNEL_OK")
</pallas_src>

<mosaic_0001>
module attributes {stable_mosaic.version = 11 : i64} {
  func.func @_linear_stats_kernel(%arg0: i32, %arg1: memref<128x32xf32, #tpu.memory_space<vmem>>, %arg2: memref<32x128xf32, #tpu.memory_space<vmem>>, %arg3: memref<1x128xf32, #tpu.memory_space<vmem>>, %arg4: memref<1x128xf32, #tpu.memory_space<vmem>>, %arg5: memref<1x128xf32, #tpu.memory_space<vmem>>, %arg6: memref<128x128xf32, #tpu.memory_space<vmem>>, %arg7: memref<2x128xf32, #tpu.memory_space<vmem>>) attributes {dimension_semantics = [#tpu.dimension_semantics<arbitrary>], iteration_bounds = array<i64: 2>, scalar_prefetch = 0 : i64, scratch_operands = 0 : i64, tpu.core_type = #tpu.core_type<tc>, window_params = [{transform_indices = @transform_0, window_bounds = array<i64: 128, 32>}, {pipeline_mode = #tpu.pipeline_mode<synchronous>, transform_indices = @transform_1, window_bounds = array<i64: 32, 128>}, {pipeline_mode = #tpu.pipeline_mode<synchronous>, transform_indices = @transform_2, window_bounds = array<i64: 1, 128>}, {pipeline_mode = #tpu.pipeline_mode<synchronous>, transform_indices = @transform_3, window_bounds = array<i64: 1, 128>}, {pipeline_mode = #tpu.pipeline_mode<synchronous>, transform_indices = @transform_4, window_bounds = array<i64: 1, 128>}, {transform_indices = @transform_5, window_bounds = array<i64: 128, 128>}, {pipeline_mode = #tpu.pipeline_mode<synchronous>, transform_indices = @transform_6, window_bounds = array<i64: 2, 128>}]} {
    %c0 = arith.constant 0 : index
    %c0_0 = arith.constant 0 : index
    %0 = vector.load %arg1[%c0, %c0_0] : memref<128x32xf32, #tpu.memory_space<vmem>>, vector<128x32xf32>
    %c0_1 = arith.constant 0 : index
    %c0_2 = arith.constant 0 : index
    %1 = vector.load %arg2[%c0_1, %c0_2] : memref<32x128xf32, #tpu.memory_space<vmem>>, vector<32x128xf32>
    %cst = arith.constant dense<0.000000e+00> : vector<128x128xf32>
    %2 = tpu.matmul %0, %1, %cst {dimension_numbers = #tpu.dot_dimension_numbers<[1], [0], [0], [1], [0, 0, 1, 1], [], []>} : vector<128x32xf32>, vector<32x128xf32>, vector<128x128xf32> -> vector<128x128xf32>
    %c0_3 = arith.constant 0 : index
    %c0_4 = arith.constant 0 : index
    %3 = vector.load %arg3[%c0_3, %c0_4] : memref<1x128xf32, #tpu.memory_space<vmem>>, vector<1x128xf32>
    %4 = vector.broadcast %3 : vector<1x128xf32> to vector<128x128xf32>
    %5 = arith.addf %2, %4 : vector<128x128xf32>
    %c0_5 = arith.constant 0 : index
    %c0_6 = arith.constant 0 : index
    %6 = vector.load %arg6[%c0_5, %c0_6] : memref<128x128xf32, #tpu.memory_space<vmem>>, vector<128x128xf32>
    tpu.vector_store %arg6[%c0_5, %c0_6], %5 {strides = array<i32>} : memref<128x128xf32, #tpu.memory_space<vmem>>, vector<128x128xf32>,
    %c0_i32 = arith.constant 0 : i32
    %7 = arith.cmpi eq, %arg0, %c0_i32 : i32
    %8 = arith.extui %7 : i1 to i32
    %c0_i32_7 = arith.constant 0 : i32
    %9 = arith.cmpi ne, %8, %c0_i32_7 : i32
    scf.if %9 {
      %cst_18 = arith.constant 0.000000e+00 : f32
      %24 = vector.broadcast %cst_18 : f32 to vector<2x128xf32>
      %c0_19 = arith.constant 0 : index
      %c0_20 = arith.constant 0 : index
      %25 = vector.load %arg7[%c0_19, %c0_20] : memref<2x128xf32, #tpu.memory_space<vmem>>, vector<2x128xf32>
      tpu.vector_store %arg7[%c0_19, %c0_20], %24 {strides = array<i32>} : memref<2x128xf32, #tpu.memory_space<vmem>>, vector<2x128xf32>,
    } else {
    }
    %c0_8 = arith.constant 0 : index
    %c0_9 = arith.constant 0 : index
    %10 = vector.load %arg7[%c0_8, %c0_9] : memref<2x128xf32, #tpu.memory_space<vmem>>, vector<1x128xf32>
    %cst_10 = arith.constant dense<0.000000e+00> : vector<128xf32>
    %11 = vector.multi_reduction <add>, %5, %cst_10 [0] : vector<128x128xf32> to vector<128xf32>
    %12 = vector.shape_cast %11 : vector<128xf32> to vector<1x128xf32>
    %13 = arith.addf %10, %12 : vector<1x128xf32>
    %c0_11 = arith.constant 0 : index
    %c0_12 = arith.constant 0 : index
    %14 = vector.load %arg7[%c0_11, %c0_12] : memref<2x128xf32, #tpu.memory_space<vmem>>, vector<1x128xf32>
    tpu.vector_store %arg7[%c0_11, %c0_12], %13 {strides = array<i32>} : memref<2x128xf32, #tpu.memory_space<vmem>>, vector<1x128xf32>,
    %c1 = arith.constant 1 : index
    %c0_13 = arith.constant 0 : index
    %15 = vector.load %arg7[%c1, %c0_13] : memref<2x128xf32, #tpu.memory_space<vmem>>, vector<1x128xf32>
    %16 = arith.mulf %5, %5 : vector<128x128xf32>
    %cst_14 = arith.constant dense<0.000000e+00> : vector<128xf32>
    %17 = vector.multi_reduction <add>, %16, %cst_14 [0] : vector<128x128xf32> to vector<128xf32>
    %18 = vector.shape_cast %17 : vector<128xf32> to vector<1x128xf32>
    %19 = arith.addf %15, %18 : vector<1x128xf32>
    %c1_15 = arith.constant 1 : index
    %c0_16 = arith.constant 0 : index
    %20 = vector.load %arg7[%c1_15, %c0_16] : memref<2x128xf32, #tpu.memory_space<vmem>>, vector<1x128xf32>
    tpu.vector_store %arg7[%c1_15, %c0_16], %19 {strides = array<i32>} : memref<2x128xf32, #tpu.memory_space<vmem>>, vector<1x128xf32>,
    %c1_i32 = arith.constant 1 : i32
    %21 = arith.cmpi eq, %arg0, %c1_i32 : i32
    %22 = arith.extui %21 : i1 to i32
    %c0_i32_17 = arith.constant 0 : i32
    %23 = arith.cmpi ne, %22, %c0_i32_17 : i32
    scf.if %23 {
      %c0_18 = arith.constant 0 : index
      %c0_19 = arith.constant 0 : index
      %24 = vector.load %arg7[%c0_18, %c0_19] : memref<2x128xf32, #tpu.memory_space<vmem>>, vector<1x128xf32>
      %cst_20 = arith.constant 3.906250e-03 : f32
      %25 = vector.broadcast %cst_20 : f32 to vector<1x128xf32>
      %26 = arith.mulf %24, %25 : vector<1x128xf32>
      %c1_21 = arith.constant 1 : index
      %c0_22 = arith.constant 0 : index
      %27 = vector.load %arg7[%c1_21, %c0_22] : memref<2x128xf32, #tpu.memory_space<vmem>>, vector<1x128xf32>
      %cst_23 = arith.constant 3.906250e-03 : f32
      %28 = vector.broadcast %cst_23 : f32 to vector<1x128xf32>
      %29 = arith.mulf %27, %28 : vector<1x128xf32>
      %30 = arith.mulf %26, %26 : vector<1x128xf32>
      %31 = arith.subf %29, %30 : vector<1x128xf32>
      %cst_24 = arith.constant 9.99999974E-6 : f32
      %32 = vector.broadcast %cst_24 : f32 to vector<1x128xf32>
      %33 = arith.addf %31, %32 : vector<1x128xf32>
      %34 = math.rsqrt %33 : vector<1x128xf32>
      %c0_25 = arith.constant 0 : index
      %c0_26 = arith.constant 0 : index
      %35 = vector.load %arg4[%c0_25, %c0_26] : memref<1x128xf32, #tpu.memory_space<vmem>>, vector<1x128xf32>
      %36 = arith.mulf %35, %34 : vector<1x128xf32>
      %c0_27 = arith.constant 0 : index
      %c0_28 = arith.constant 0 : index
      %37 = vector.load %arg5[%c0_27, %c0_28] : memref<1x128xf32, #tpu.memory_space<vmem>>, vector<1x128xf32>
      %38 = arith.mulf %26, %36 : vector<1x128xf32>
      %39 = arith.subf %37, %38 : vector<1x128xf32>
      %c0_29 = arith.constant 0 : index
      %c0_30 = arith.constant 0 : index
      %40 = vector.load %arg7[%c0_29, %c0_30] : memref<2x128xf32, #tpu.memory_space<vmem>>, vector<1x128xf32>
      tpu.vector_store %arg7[%c0_29, %c0_30], %36 {strides = array<i32>} : memref<2x128xf32, #tpu.memory_space<vmem>>, vector<1x128xf32>,
      %c1_31 = arith.constant 1 : index
      %c0_32 = arith.constant 0 : index
      %41 = vector.load %arg7[%c1_31, %c0_32] : memref<2x128xf32, #tpu.memory_space<vmem>>, vector<1x128xf32>
      tpu.vector_store %arg7[%c1_31, %c0_32], %39 {strides = array<i32>} : memref<2x128xf32, #tpu.memory_space<vmem>>, vector<1x128xf32>,
    } else {
    }
    return
  }
  func.func @transform_0(%arg0: i32) -> (i32, i32) {
    %c0_i32 = arith.constant 0 : i32
    %c0_i32_0 = arith.constant 0 : i32
    return %arg0, %c0_i32 : i32, i32
  }
  func.func @transform_1(%arg0: i32) -> (i32, i32) {
    %c0_i32 = arith.constant 0 : i32
    %c0_i32_0 = arith.constant 0 : i32
    %c0_i32_1 = arith.constant 0 : i32
    return %c0_i32, %c0_i32_0 : i32, i32
  }
  func.func @transform_2(%arg0: i32) -> (i32, i32) {
    %c0_i32 = arith.constant 0 : i32
    %c0_i32_0 = arith.constant 0 : i32
    %c0_i32_1 = arith.constant 0 : i32
    return %c0_i32, %c0_i32_0 : i32, i32
  }
  func.func @transform_3(%arg0: i32) -> (i32, i32) {
    %c0_i32 = arith.constant 0 : i32
    %c0_i32_0 = arith.constant 0 : i32
    %c0_i32_1 = arith.constant 0 : i32
    return %c0_i32, %c0_i32_0 : i32, i32
  }
  func.func @transform_4(%arg0: i32) -> (i32, i32) {
    %c0_i32 = arith.constant 0 : i32
    %c0_i32_0 = arith.constant 0 : i32
    %c0_i32_1 = arith.constant 0 : i32
    return %c0_i32, %c0_i32_0 : i32, i32
  }
  func.func @transform_5(%arg0: i32) -> (i32, i32) {
    %c0_i32 = arith.constant 0 : i32
    %c0_i32_0 = arith.constant 0 : i32
    return %arg0, %c0_i32 : i32, i32
  }
  func.func @transform_6(%arg0: i32) -> (i32, i32) {
    %c0_i32 = arith.constant 0 : i32
    %c0_i32_0 = arith.constant 0 : i32
    %c0_i32_1 = arith.constant 0 : i32
    return %c0_i32, %c0_i32_0 : i32, i32
  }
}

</mosaic_0001>

<bundles_post_ra>
// kernel: tpu_custom_call.1
= control target key start
LH: loop header
LB: loop body
LE: loop exit
PB: predicated region body
PF: predicated region fallthrough
CT: control target
= control target key end

     0   :  { %12 = vsyncpa [#allocation3], 0  ;;  %s1030_s0 = inlined_call_operand.vmem [shape: f32[256,32], index: 0, kind: input, shape index: {}]   ;;  %s1031_s1 = inlined_call_operand.vmem [shape: f32[32,128], index: 1, kind: input, shape index: {}]   ;;  %s1032_s2 = inlined_call_operand.vmem [shape: f32[1,128], index: 2, kind: input, shape index: {}]   ;;  %s1033_s3 = inlined_call_operand.vmem [shape: f32[1,128], index: 3, kind: input, shape index: {}]   ;;  %s1034_s4 = inlined_call_operand.vmem [shape: f32[1,128], index: 4, kind: input, shape index: {}]   ;;  %s1035_s5 = inlined_call_operand.hbm [shape: f32[256,128], index: 5, kind: output, shape index: {0}]   ;;  %s1036_s6 = inlined_call_operand.hbm [shape: f32[2,128], index: 6, kind: output, shape index: {1}]  }
   0x1   :  { %14 = vsyncpa [#allocation3 + $0x1], 0 }
   0x2   :  { %15 = vsyncpa [#allocation5], 0  ;;  %s837_s21 = smov 0   ;;  %s839_s22 = smov 0  }
   0x3   :  { %s841_s23 = smov 0   ;;  %s843_s24 = smov 0  }
   0x4 LB: > { %s858_s25 = sadd.s32 4294967295, %s796_s24   ;;  %s605_s26 = sadd.s32 4294967294, %s796_s24   ;;  %s796_s24 = sphi %s843_s24, %s1042_s24   ;;  %s792_s23 = sphi %s841_s23, %s1041_s23   ;;  %s788_s22 = sphi %s839_s22, %s1040_s22   ;;  %s784_s21 = sphi %s837_s21, %s1039_s21  }
   0x5   : > { %s862_s27 = sadd.s32 1, %s796_s24   ;;  %s138_s28 = sadd.s32 1, %s792_s23 }
   0x6   : > { %s135_s29 = ssub.s32 %s796_s24, %s862_s27  ;;  %p148_p0 = scmp.ne.s32.totalorder %s792_s23, %s788_s22 }
   0x7   : > { %p136_p1 = scmp.eq.s32.totalorder %s135_s29, 0  ;;  %p149_p2 = scmp.eq.s32.totalorder %s858_s25, 1 }
   0x8   : > { %p154_p3 = scmp.ne.s32.totalorder %s788_s22, %s784_s21  ;;  %p155_p4 = scmp.eq.s32.totalorder %s605_s26, 1 }
   0x9   : > { %s873_s30 = scalar_select %p136_p1, %s792_s23, %s138_s28  }
   0xa   : > { %p877_p5 = por %p149_p2, %p148_p0  ;;  %p881_p6 = por %p155_p4, %p154_p3 }
   0xb   : > { %p608_p7 = scmp.ge.s32.totalorder %s796_s24, 1  ;;  %p215_p8 = scmp.lt.s32.totalorder %s796_s24, 3 }
   0xd   : > { %p216_p9 = pnand %p608_p7, %p215_p8 }
   0xe   : > { %s610_s13 = sshll.u32 (!%p216_p9), %s858_s25, 4  ;;  %s240_s28 = sand.u32 (!%p216_p9), 1, %s788_s22  }
   0xf   : > { %219 = sbr.rel (%p216_p9) target bundleno = 296 (0x128), region = 40  ;;  %p246_p10 = scmp.lt.s32.totalorder (!%p216_p9), %s610_s13, 31 }
  0x10   : > { %s609_s29 = sshll.u32 (!%p216_p9), %s240_s28, 7  ;;  %p628_p11 = scmp.ne.s32.totalorder (!%p216_p9), %s858_s25, 0 }
  0x11   : > { %s943_s11 = scalar_lea.vmem (!%p216_p9), [#allocation2], %s609_s29 }
  0x14   : > { %v271_v0 = vld [vmem:[%s1031_s1 + $0x18] sm:$0xff]  ;;  %v270_v1 = vld [vmem:[%s1031_s1 + $0x10] sm:$0xff]  ;;  %v269_v2 = vld [vmem:[%s1031_s1 + $0x8] sm:$0xff]  ;;  %s1044_s13 = smov (!%p246_p10, %s610_s13), 31  ;;  %vm276_vm0 = vcmask 261120  }
  0x15   : > { %639 = vmatpush.msra.mxu2 %v271_v0  ;;  %640 = vmatpush.msra.mxu3 %v271_v0  ;;  %v268_v3 = vld [vmem:[%s1031_s1] sm:$0xff]  ;;  %s611_s18 = sshll.u32 %s1044_s13, 3 }
  0x16   : > { %337 = vmatpush.msra.mxu0 %v271_v0  ;;  %638 = vmatpush.msra.mxu1 %v271_v0  ;;  %s903_s26 = scalar_lea.vmem %s1030_s0, %s611_s18  ;;  %v699_v20 = vld [vmem:[%s1032_s2] ss:$0 sm:$0xff] }
  0x17   : > { %642 = vmatpush.msra.mxu2 %v270_v1  ;;  %643 = vmatpush.msra.mxu3 %v270_v1  ;;  %v260_v4 = vld [vmem:[%s903_s26 + $0x40] sm:$0xff]  ;;  %v261_v8 = vld [vmem:[%s903_s26 + $0x48] sm:$0xff]  ;;  %v262_v12 = vld [vmem:[%s903_s26 + $0x50] sm:$0xff] }
  0x18   : > { %338 = vmatpush.msra.mxu0 %v270_v1  ;;  %641 = vmatpush.msra.mxu1 %v270_v1  ;;  %v264_v5 = vld [vmem:[%s903_s26 + $0x60] sm:$0xff]  ;;  %v265_v9 = vld [vmem:[%s903_s26 + $0x68] sm:$0xff]  ;;  %v266_v13 = vld [vmem:[%s903_s26 + $0x70] sm:$0xff] }
  0x19   : > { %645 = vmatpush.msra.mxu2 %v269_v2  ;;  %646 = vmatpush.msra.mxu3 %v269_v2  ;;  %v252_v6 = vld [vmem:[%s903_s26] sm:$0xff]  ;;  %v253_v10 = vld [vmem:[%s903_s26 + $0x8] sm:$0xff]  ;;  %v254_v14 = vld [vmem:[%s903_s26 + $0x10] sm:$0xff] }
  0x1a   : > { %339 = vmatpush.msra.mxu0 %v269_v2  ;;  %644 = vmatpush.msra.mxu1 %v269_v2  ;;  %v256_v7 = vld [vmem:[%s903_s26 + $0x20] sm:$0xff]  ;;  %v257_v11 = vld [vmem:[%s903_s26 + $0x28] sm:$0xff]  ;;  %v258_v15 = vld [vmem:[%s903_s26 + $0x30] sm:$0xff] }
  0x1b   : > { %648 = vmatpush.msra.mxu2 %v268_v3  ;;  %649 = vmatpush.msra.mxu3 %v268_v3  ;;  %v263_v16 = vld [vmem:[%s903_s26 + $0x58] sm:$0xff] }
  0x1c   : > { %620 = vmatmul.msk.f32.vlgmr.msra.gmra.mxu2 %vm276_vm0, %v260_v4  ;;  %624 = vmatmul.msk.f32.vlgmr.msra.gmra.mxu3 %vm276_vm0, %v264_v5  ;;  %v267_v17 = vld [vmem:[%s903_s26 + $0x78] sm:$0xff] }
  0x1d   : > { %340 = vmatpush.msra.mxu0 %v268_v3  ;;  %647 = vmatpush.msra.mxu1 %v268_v3  ;;  %v255_v18 = vld [vmem:[%s903_s26 + $0x18] sm:$0xff] }
  0x1e   : > { %612 = vmatmul.msk.f32.vlgmr.msra.gmra.mxu0 %vm276_vm0, %v252_v6  ;;  %616 = vmatmul.msk.f32.vlgmr.msra.gmra.mxu1 %vm276_vm0, %v256_v7  ;;  %v259_v19 = vld [vmem:[%s903_s26 + $0x38] sm:$0xff] }
  0x24   : > { %621 = vmatmul.msk.f32.gmra.mxu2 %vm276_vm0, %v261_v8  ;;  %625 = vmatmul.msk.f32.gmra.mxu3 %vm276_vm0, %v265_v9 }
  0x26   : > { %613 = vmatmul.msk.f32.gmra.mxu0 %vm276_vm0, %v253_v10  ;;  %617 = vmatmul.msk.f32.gmra.mxu1 %vm276_vm0, %v257_v11 }
  0x2c   : > { %622 = vmatmul.msk.f32.gmra.mxu2 %vm276_vm0, %v262_v12  ;;  %626 = vmatmul.msk.f32.gmra.mxu3 %vm276_vm0, %v266_v13 }
  0x2e   : > { %614 = vmatmul.msk.f32.gmra.mxu0 %vm276_vm0, %v254_v14  ;;  %618 = vmatmul.msk.f32.gmra.mxu1 %vm276_vm0, %v258_v15 }
  0x34   : > { %623 = vmatmul.msk.f32.gmra.mxu2 %vm276_vm0, %v263_v16  ;;  %627 = vmatmul.msk.f32.gmra.mxu3 %vm276_vm0, %v267_v17 }
  0x36   : > { %615 = vmatmul.msk.f32.gmra.mxu0 %vm276_vm0, %v255_v18  ;;  %619 = vmatmul.msk.f32.gmra.mxu1 %vm276_vm0, %v259_v19 }
  0x9b   : > { %v342_v21 = vpop.f32.mrf.mxu0  ;;  %v354_v22 = vpop.f32.mrf.mxu1 }
  0x9c   : > { %v343_v23 = vadd.f32 %v699_v20, %v342_v21  ;;  %v355_v24 = vadd.f32 %v699_v20, %v354_v22 }
  0x9e   : > { %390 = vst [vmem:[%s943_s11] sm:$0xff] %v343_v23 }
  0x9f   : > { %394 = vst [vmem:[%s943_s11 + $0x20] sm:$0xff] %v355_v24  ;;  %v366_v25 = vpop.f32.mrf.mxu2  ;;  %v378_v26 = vpop.f32.mrf.mxu3 }
  0xa0   : > { %v947_v27 = vadd.f32 %v699_v20, %v366_v25  ;;  %v949_v28 = vadd.f32 %v699_v20, %v378_v26 }
  0xa2   : > { %398 = vst [vmem:[%s943_s11 + $0x40] sm:$0xff] %v947_v27 }
  0xa3   : > { %402 = vst [vmem:[%s943_s11 + $0x60] sm:$0xff] %v949_v28  ;;  %v345_v29 = vpop.f32.mrf.mxu0  ;;  %v357_v30 = vpop.f32.mrf.mxu1 }
  0xa4   : > { %v346_v31 = vadd.f32 %v699_v20, %v345_v29  ;;  %v358_v32 = vadd.f32 %v699_v20, %v357_v30 }
  0xa6   : > { %391 = vst [vmem:[%s943_s11 + $0x8] sm:$0xff] %v346_v31 }
  0xa7   : > { %395 = vst [vmem:[%s943_s11 + $0x28] sm:$0xff] %v358_v32  ;;  %v369_v33 = vpop.f32.mrf.mxu2  ;;  %v381_v34 = vpop.f32.mrf.mxu3 }
  0xa8   : > { %v370_v35 = vadd.f32 %v699_v20, %v369_v33  ;;  %v957_v36 = vadd.f32 %v699_v20, %v381_v34 }
  0xaa   : > { %399 = vst [vmem:[%s943_s11 + $0x48] sm:$0xff] %v370_v35 }
  0xab   : > { %403 = vst [vmem:[%s943_s11 + $0x68] sm:$0xff] %v957_v36  ;;  %v348_v37 = vpop.f32.mrf.mxu0  ;;  %v360_v38 = vpop.f32.mrf.mxu1 }
  0xac   : > { %v349_v39 = vadd.f32 %v699_v20, %v348_v37  ;;  %v361_v40 = vadd.f32 %v699_v20, %v360_v38 }
  0xae   : > { %392 = vst [vmem:[%s943_s11 + $0x10] sm:$0xff] %v349_v39 }
  0xaf   : > { %396 = vst [vmem:[%s943_s11 + $0x30] sm:$0xff] %v361_v40  ;;  %v372_v41 = vpop.f32.mrf.mxu2  ;;  %v384_v42 = vpop.f32.mrf.mxu3 }
  0xb0   : > { %v373_v43 = vadd.f32 %v699_v20, %v372_v41  ;;  %v385_v44 = vadd.f32 %v699_v20, %v384_v42 }
  0xb2   : > { %400 = vst [vmem:[%s943_s11 + $0x50] sm:$0xff] %v373_v43 }
  0xb3   : > { %404 = vst [vmem:[%s943_s11 + $0x70] sm:$0xff] %v385_v44  ;;  %v351_v45 = vpop.f32.mrf.mxu0  ;;  %v363_v46 = vpop.f32.mrf.mxu1 }
  0xb4   : > { %v352_v47 = vadd.f32 %v699_v20, %v351_v45  ;;  %v364_v48 = vadd.f32 %v699_v20, %v363_v46 }
  0xb6   : > { %393 = vst [vmem:[%s943_s11 + $0x18] sm:$0xff] %v352_v47 }
  0xb7   : > { %397 = vst [vmem:[%s943_s11 + $0x38] sm:$0xff] %v364_v48  ;;  %v375_v49 = vpop.f32.mrf.mxu2  ;;  %v387_v50 = vpop.f32.mrf.mxu3  ;;  %409 = sbr.rel (%p628_p11) target bundleno = 190 (0xbe), region = 44 }
  0xb8   : > { %v376_v51 = vadd.f32 %v699_v20, %v375_v49  ;;  %v388_v52 = vadd.f32 %v699_v20, %v387_v50 }
  0xba   : > { %401 = vst [vmem:[%s943_s11 + $0x58] sm:$0xff] %v376_v51 }
  0xbb   : > { %405 = vst [vmem:[%s943_s11 + $0x78] sm:$0xff] %v388_v52 }
  0xbc   : > { %v798_v53 = vmov 0.0  }
  0xbd   : > { %410 = vst [vmem:[#allocation4] sm:$0x3] %v798_v53 }
  0xbe PF: > { %v412_v54 = vadd.f32 %v346_v31, %v343_v23  ;;  %v436_v55 = vmul.f32 %v343_v23, %v343_v23  ;;  %v437_v56 = vmul.f32 %v346_v31, %v346_v31  ;;  %v438_v58 = vmul.f32 %v349_v39, %v349_v39  ;;  %p629_p12 = scmp.ne.s32.totalorder %s858_s25, 1 }
  0xbf   : > { %v439_v60 = vmul.f32 %v352_v47, %v352_v47  ;;  %v440_v63 = vmul.f32 %v355_v24, %v355_v24  ;;  %v441_v2 = vmul.f32 %v358_v32, %v358_v32  ;;  %v442_v5 = vmul.f32 %v361_v40, %v361_v40 }
  0xc0   : > { %v413_v57 = vadd.f32 %v412_v54, %v349_v39  ;;  %v452_v61 = vadd.f32 %v437_v56, %v436_v55  ;;  %v443_v8 = vmul.f32 %v364_v48, %v364_v48  ;;  %v444_v11 = vmul.f32 %v947_v27, %v947_v27 }
  0xc1   : > { %v445_v14 = vmul.f32 %v370_v35, %v370_v35  ;;  %v446_v17 = vmul.f32 %v373_v43, %v373_v43  ;;  %v447_v20 = vmul.f32 %v376_v51, %v376_v51  ;;  %v448_v23 = vmul.f32 %v949_v28, %v949_v28 }
  0xc2   : > { %v414_v59 = vadd.f32 %v413_v57, %v352_v47  ;;  %v453_v0 = vadd.f32 %v452_v61, %v438_v58  ;;  %v449_v26 = vmul.f32 %v957_v36, %v957_v36  ;;  %v450_v30 = vmul.f32 %v385_v44, %v385_v44 }
  0xc3   : > { %v451_v33 = vmul.f32 %v388_v52, %v388_v52 }
  0xc4   : > { %v415_v62 = vadd.f32 %v414_v59, %v355_v24  ;;  %v454_v3 = vadd.f32 %v453_v0, %v439_v60  ;;  %v411_v46 = vld [vmem:[#allocation4] sm:$0x1] }
  0xc6   : > { %v416_v1 = vadd.f32 %v415_v62, %v358_v32  ;;  %v455_v6 = vadd.f32 %v454_v3, %v440_v63 }
  0xc8   : > { %v417_v4 = vadd.f32 %v416_v1, %v361_v40  ;;  %v456_v9 = vadd.f32 %v455_v6, %v441_v2 }
  0xca   : > { %v418_v7 = vadd.f32 %v417_v4, %v364_v48  ;;  %v457_v12 = vadd.f32 %v456_v9, %v442_v5 }
  0xcc   : > { %v419_v10 = vadd.f32 %v418_v7, %v947_v27  ;;  %v458_v15 = vadd.f32 %v457_v12, %v443_v8 }
  0xce   : > { %v420_v13 = vadd.f32 %v419_v10, %v370_v35  ;;  %v459_v18 = vadd.f32 %v458_v15, %v444_v11 }
  0xd0   : > { %v421_v16 = vadd.f32 %v420_v13, %v373_v43  ;;  %v460_v21 = vadd.f32 %v459_v18, %v445_v14 }
  0xd2   : > { %v422_v19 = vadd.f32 %v421_v16, %v376_v51  ;;  %v461_v24 = vadd.f32 %v460_v21, %v446_v17 }
  0xd4   : > { %v423_v22 = vadd.f32 %v422_v19, %v949_v28  ;;  %v462_v27 = vadd.f32 %v461_v24, %v447_v20 }
  0xd6   : > { %v424_v25 = vadd.f32 %v423_v22, %v957_v36  ;;  %v463_v31 = vadd.f32 %v462_v27, %v448_v23 }
  0xd8   : > { %v425_v29 = vadd.f32 %v424_v25, %v385_v44  ;;  %v464_v34 = vadd.f32 %v463_v31, %v449_v26  ;;  %v435_v44 = vld [vmem:[#allocation4 + $0x1] sm:$0x1] }
  0xda   : > { %v426_v32 = vadd.f32 %v425_v29, %v388_v52  ;;  %v465_v37 = vadd.f32 %v464_v34, %v450_v30 }
  0xdc   : > { %v427_v35 = vrot.slane %v426_v32, 4  ;;  %v466_v39 = vadd.f32 %v465_v37, %v451_v33 }
  0xde   : > { %v428_v38 = vadd.f32 %v427_v35, %v426_v32  ;;  %v467_v41 = vrot.slane %v466_v39, 4 }
  0xe0   : > { %v429_v40 = vrot.slane %v428_v38, 2  ;;  %v468_v42 = vadd.f32 %v467_v41, %v466_v39 }
  0xe2   : > { %v430_v28 = vadd.f32 %v429_v40, %v428_v38  ;;  %v469_v45 = vrot.slane %v468_v42, 2 }
  0xe4   : > { %v431_v43 = vrot.slane %v430_v28, 1  ;;  %v470_v36 = vadd.f32 %v469_v45, %v468_v42 }
  0xe6   : > { %v432_v47 = vadd.f32 %v431_v43, %v430_v28  ;;  %v471_v49 = vrot.slane %v470_v36, 1 }
  0xe8   : > { %v433_v48 = vadd.f32 %v432_v47, %v411_v46  ;;  %v472_v50 = vadd.f32 %v471_v49, %v470_v36  ;;  %478 = sbr.rel (%p629_p12) target bundleno = 275 (0x113), region = 48 }
  0xea   : > { %434 = vst [vmem:[#allocation4] sm:$0x1] %v433_v48  ;;  %v473_v51 = vadd.f32 %v472_v50, %v435_v44 }
  0xec   : > { %474 = vst [vmem:[#allocation4 + $0x1] sm:$0x1] %v473_v51 }
  0xed   : > { %v496_v1 = vld [vmem:[%s1033_s3] sm:$0x1] }
  0xee   : > { %v498_v4 = vld [vmem:[%s1034_s4] sm:$0x1] }
  0xf1   : > { %v479_v52 = vld [vmem:[#allocation4] sm:$0x1] }
  0xf2   : > { %v480_v54 = vmul.f32 0.00390625, %v479_v52 }
  0xf3   : > { %v481_v53 = vld [vmem:[#allocation4 + $0x1] sm:$0x1] }
  0xf4   : > { %v482_v55 = vmul.f32 0.00390625, %v481_v53  ;;  %v483_v56 = vmul.f32 %v480_v54, %v480_v54 }
  0xf6   : > { %v484_v57 = vsub.f32 %v482_v55, %v483_v56 }
  0xf8   : > { %v485_v58 = vadd.f32 1e-05, %v484_v57 }
  0xfa   : > { %700 = vrsqrt.f32 %v485_v58  ;;  %vm492_vm1 = vweird.f32 %v485_v58 }
 0x100   : > { %v701_v59 = vpop.eup %700 }
 0x101   : > { %v487_v60 = vmul.f32 %v701_v59, %v485_v58  ;;  %vm493_vm2 = vweird.f32 %v701_v59 }
 0x102   : > { %vm494_vm3 = vmor %vm492_vm1, %vm493_vm2 }
 0x103   : > { %v488_v61 = vmul.f32 %v701_v59, %v487_v60 }
 0x105   : > { %v489_v62 = vmul.f32 0.5, %v488_v61 }
 0x107   : > { %v490_v63 = vsub.f32 1.5, %v489_v62 }
 0x109   : > { %v491_v0 = vmul.f32 %v701_v59, %v490_v63 }
 0x10b   : > { %v495_v2 = vsel %vm494_vm3, %v701_v59, %v491_v0 }
 0x10c   : > { %v497_v3 = vmul.f32 %v496_v1, %v495_v2 }
 0x10e   : > { %501 = vst [vmem:[#allocation4] sm:$0x1] %v497_v3  ;;  %v499_v5 = vmul.f32 %v497_v3, %v480_v54 }
 0x110   : > { %v500_v6 = vsub.f32 %v498_v4, %v499_v5 }
 0x112   : > { %502 = vst [vmem:[#allocation4 + $0x1] sm:$0x1] %v500_v6 }
 0x113 PF: > { %s637_s16 = sshll.u32 %s858_s25, 7  ;;  %s516_s20 = sshll.u32 %s943_s11, 4  ;;  %s517_s20 = int_to_ptr.vmem [resolvable:$true] %s516_s20 }
 0x114   : > { %s515_s19 = scalar_lea.hbm %s1035_s5, %s637_s16  ;;  %s504_s29 = scalar_lea.sflag [#allocation3], %s240_s28 }
 0x115   : > { %s518_s26 = sshll.u32 %s515_s19, 4  ;;  %s722_s14 = scalar_lea.hbm %s1035_s5, 256  ;;  %s519_s26 = int_to_ptr.hbm [resolvable:$true] %s518_s26 }
 0x116   : > { %s716_s9 = sshra.s32 %s519_s26, 4  ;;  %s717_s9 = int_to_ptr.hbm [resolvable:$true] %s716_s9 }
 0x117   : > { %s718_s10 = scalar_lea.hbm %s717_s9, 128  ;;  %p723_p3 = scmp.lt.s32.totalorder %s717_s9, %s1035_s5 }
 0x118   : > { %p719_p13 = scmp.ne.s32.totalorder %s717_s9, %s718_s10  ;;  %p724_p4 = scmp.lt.s32.totalorder %s722_s14, %s718_s10 }
 0x11a   : > { %p720_p0 = pnand %p719_p13, %p877_p5  ;;  %p725_p7 = por %p724_p4, %p723_p3 }
 0x11c   : > { %p721_p1 = pneg %p720_p0 }
 0x11e   : > { %p726_p8 = pnand %p725_p7, %p721_p1 }
 0x120   : > { %729 = shalt.err (!%p726_p8)
}
 0x121   : > { %s799_s28 = smov 128   ;;  %s800_s11 = smov 8  }
 0x122   : > { %650 = dma.vmem_to_hbm [thread:$0]  (%p877_p5), %s517_s20, 2048, %s519_s26, %s504_s29, %s799_s28, %s799_s28, %s800_s11  }
 0x123   : > { %s801_s16 = smov [#allocation4]   ;;  %s533_s13 = sshll.u32 %s1036_s6, 4  ;;  %s534_s13 = int_to_ptr.hbm [resolvable:$true] %s533_s13 }
 0x124   : > { %s531_s18 = sshll.u32 %s801_s16, 4  ;;  %s532_s18 = int_to_ptr.vmem [resolvable:$true] %s531_s18 }
 0x125   : > { %652 = dma.vmem_to_hbm [thread:$0]  (%p149_p2), %s532_s18, 32, %s534_s13, [#allocation5]  }
 0x126   : > { %775 = dma.done.wait (%p149_p2), [#allocation5], 32  }
 0x127   : > { %777 = vsyncadd (%p149_p2), [#allocation5], 4294967264 }
 0x128 PF: > { %p662_p5 = scmp.ge.s32.totalorder %s796_s24, 2  ;;  %s550_s7 = sand.u32 1, %s784_s21  }
 0x129   : > { %s551_s20 = scalar_lea.sflag [#allocation3], %s550_s7 }
 0x12a   : > { %p657_p9 = pnand %p662_p5, %p881_p6 }
 0x12c   : > { %p658_p10 = pneg %p657_p9 }
 0x12e   : > { %779 = dma.done.wait (%p658_p10), %s551_s20, 2048  }
 0x12f   : > { %781 = vsyncadd (%p658_p10), %s551_s20, 4294965248  ;;  %p18_p11 = scmp.ge.s32.totalorder %s862_s27, 4   ;;  %s1039_s21 = smov %s788_s22 }
 0x130   : > { %s1040_s22 = smov %s792_s23  ;;  %s1041_s23 = smov %s873_s30 }
 0x131   : > { %s1042_s24 = smov %s862_s27  ;;  %20 = sbr.rel (!%p18_p11) target bundleno = 4 (0x4), region = 91 }
 0x136   :  { %557 = vsyncpa [#allocation3], 1 }
 0x137   :  { %559 = vsyncpa [#allocation3 + $0x1], 1 }
 0x138   :  { %560 = vsyncpa [#allocation5], 1 }

</bundles_post_ra>
